<compile_context>
chip_gen: v7x
topology: tpu7x:2x2x1
jax: 0.10.0
libtpu: 0.0.40
codegen_flags: <defaults>
</compile_context>

<pallas_src>
import jax
import jax.numpy as jnp
from jax.experimental import pallas as pl
from jax.experimental.pallas import tpu as pltpu  # noqa: F401  (imported per template)


def head_kernel(h11_ref, h12_ref, wm_ref, wx_ref, b_ref, o_ref):
    # h11_ref, h12_ref : (B, H) f32   CLS vectors of the last two BERT layers
    # wm_ref           : (H, Opad) bf16  = 0.5 * fc.weight[:, :H].T   (zero-padded cols)
    # wx_ref           : (H, Opad) bf16  =       fc.weight[:, H:].T   (zero-padded cols)
    # b_ref            : (1, Opad) f32   fc bias (zero-padded cols)
    # o_ref            : (B, Opad) f32
    h11 = h11_ref[...]
    h12 = h12_ref[...]

    # Pooling over the "layer" axis of stack([h11, h12], 1), kept in f32 on the
    # VPU.  The mean's *0.5 is pre-folded into wm_ref, so sum-pool suffices.
    sum_pool = h11 + h12                   # (B, H)
    max_pool = jnp.maximum(h11, h12)       # (B, H)

    # Split contraction (no lane-axis concatenate): f32 accumulation on the MXU.
    acc = jnp.dot(sum_pool.astype(wm_ref.dtype), wm_ref[...],
                  preferred_element_type=jnp.float32)
    acc = acc + jnp.dot(max_pool.astype(wx_ref.dtype), wx_ref[...],
                        preferred_element_type=jnp.float32)

    # TODO(synk): training-mode dropout (fc_dp=0.4) not implemented (eval semantics).
    o_ref[...] = acc + b_ref[...]


def bert_on_questions_head(hidden_11, hidden_12, w_mean, w_max, b_pad, out_dim):
    """hidden_* : (B, S, H) f32; w_mean/w_max : (H, Opad) bf16; b_pad : (1, Opad) f32."""
    B, S, H = hidden_11.shape
    O_pad = w_mean.shape[1]

    # CLS extraction as a tiny XLA strided slice so the kernel only moves
    # (B, H) per layer rather than (B, S, H).
    h11 = hidden_11[:, 0, :]               # (B, H)
    h12 = hidden_12[:, 0, :]               # (B, H)

    out_pad = pl.pallas_call(
        head_kernel,
        out_shape=jax.ShapeDtypeStruct((B, O_pad), jnp.float32),
        in_specs=[
            pl.BlockSpec((B, H), lambda: (0, 0)),
            pl.BlockSpec((B, H), lambda: (0, 0)),
            pl.BlockSpec((H, O_pad), lambda: (0, 0)),
            pl.BlockSpec((H, O_pad), lambda: (0, 0)),
            pl.BlockSpec((1, O_pad), lambda: (0, 0)),
        ],
        out_specs=pl.BlockSpec((B, O_pad), lambda: (0, 0)),
    )(h11, h12, w_mean, w_max, b_pad)
    return out_pad[:, :out_dim]


def prepare_head_params(fc_weight, fc_bias, hidden_size, o_pad=128):
    """Split/transpose/scale/pad the PyTorch-layout fc params for the kernel.

    fc_weight: (OUT, 2H) f32, fc_bias: (OUT,) f32 (PyTorch nn.Linear layout).
    Returns w_mean (H, o_pad) bf16, w_max (H, o_pad) bf16, b_pad (1, o_pad) f32.
    """
    out_dim = fc_weight.shape[0]
    w_t = fc_weight.T.astype(jnp.float32)                 # (2H, OUT)
    wm = (w_t[:hidden_size] * 0.5).astype(jnp.bfloat16)   # fold mean's 1/2
    wx = w_t[hidden_size:].astype(jnp.bfloat16)

    w_mean = jnp.zeros((hidden_size, o_pad), jnp.bfloat16).at[:, :out_dim].set(wm)
    w_max = jnp.zeros((hidden_size, o_pad), jnp.bfloat16).at[:, :out_dim].set(wx)
    b_pad = jnp.zeros((1, o_pad), jnp.float32).at[:, :out_dim].set(
        fc_bias.astype(jnp.float32))
    return w_mean, w_max, b_pad


def reference_head(hidden_11, hidden_12, fc_weight, fc_bias):
    """Pure-JAX f32 reference matching the PyTorch module semantics (eval)."""
    h11 = hidden_11[:, 0, :]
    h12 = hidden_12[:, 0, :]
    all_h = jnp.stack([h11, h12], axis=1)                 # (B, 2, H)
    mean_p = jnp.mean(all_h, axis=1)                      # (B, H)
    max_p = jnp.max(all_h, axis=1)                        # (B, H)
    x = jnp.concatenate([mean_p, max_p], axis=1)          # (B, 2H)
    return x @ fc_weight.T + fc_bias


if __name__ == "__main__":
    # Small shapes consistent with the module: hidden size 768 is hardcoded in
    # the PyTorch forward (reshape to (-1, 1, 768)), so keep H = 768.
    B = 2            # batch
    S = 8            # sequence length (only the CLS position feeds the head)
    H = 768          # BERT hidden size
    OUT = 30         # output_shape
    O_PAD = 128      # lane-padded output width

    key = jax.random.PRNGKey(0)
    k_h11, k_h12, k_w, k_b = jax.random.split(key, 4)

    # Synthetic deterministic "BERT hidden states" for the last two layers.
    hidden_11 = jax.random.normal(k_h11, (B, S, H), dtype=jnp.float32)
    hidden_12 = jax.random.normal(k_h12, (B, S, H), dtype=jnp.float32)

    # fc: Linear(2*768 -> OUT), PyTorch layout (OUT, 2H) / (OUT,).
    fc_weight = jax.random.normal(k_w, (OUT, 2 * H), dtype=jnp.float32) * 0.02
    fc_bias = jax.random.normal(k_b, (OUT,), dtype=jnp.float32) * 0.02

    w_mean, w_max, b_pad = prepare_head_params(fc_weight, fc_bias, H, O_PAD)

    out = bert_on_questions_head(hidden_11, hidden_12, w_mean, w_max, b_pad, OUT)
    out = jax.block_until_ready(out)

    ref = reference_head(hidden_11, hidden_12, fc_weight, fc_bias)
    assert out.shape == (B, OUT)
    # Tolerance loosened for bf16 weights/activations at the MXU (f32 accumulate).
    assert jnp.allclose(out, ref, atol=2e-2, rtol=2e-2), "mismatch vs reference"

    print("KERNEL_OK")
</pallas_src>

<mosaic_0001>
module attributes {stable_mosaic.version = 11 : i64} {
  func.func @head_kernel(%arg0: memref<2x768xf32, #tpu.memory_space<vmem>>, %arg1: memref<2x768xf32, #tpu.memory_space<vmem>>, %arg2: memref<768x128xbf16, #tpu.memory_space<vmem>>, %arg3: memref<768x128xbf16, #tpu.memory_space<vmem>>, %arg4: memref<1x128xf32, #tpu.memory_space<vmem>>, %arg5: memref<2x128xf32, #tpu.memory_space<vmem>>) attributes {dimension_semantics = [], scalar_prefetch = 0 : i64, scratch_operands = 0 : i64, tpu.core_type = #tpu.core_type<tc>} {
    %c0 = arith.constant 0 : index
    %c0_0 = arith.constant 0 : index
    %0 = vector.load %arg0[%c0, %c0_0] : memref<2x768xf32, #tpu.memory_space<vmem>>, vector<2x768xf32>
    %c0_1 = arith.constant 0 : index
    %c0_2 = arith.constant 0 : index
    %1 = vector.load %arg1[%c0_1, %c0_2] : memref<2x768xf32, #tpu.memory_space<vmem>>, vector<2x768xf32>
    %2 = arith.addf %0, %1 : vector<2x768xf32>
    %3 = arith.maximumf %0, %1 : vector<2x768xf32>
    %4 = arith.truncf %2 : vector<2x768xf32> to vector<2x768xbf16>
    %c0_3 = arith.constant 0 : index
    %c0_4 = arith.constant 0 : index
    %5 = vector.load %arg2[%c0_3, %c0_4] : memref<768x128xbf16, #tpu.memory_space<vmem>>, vector<768x128xbf16>
    %cst = arith.constant dense<0.000000e+00> : vector<2x128xf32>
    %6 = tpu.matmul %4, %5, %cst {dimension_numbers = #tpu.dot_dimension_numbers<[1], [0], [0], [1], [0, 0, 1, 1], [], []>} : vector<2x768xbf16>, vector<768x128xbf16>, vector<2x128xf32> -> vector<2x128xf32>
    %7 = arith.truncf %3 : vector<2x768xf32> to vector<2x768xbf16>
    %c0_5 = arith.constant 0 : index
    %c0_6 = arith.constant 0 : index
    %8 = vector.load %arg3[%c0_5, %c0_6] : memref<768x128xbf16, #tpu.memory_space<vmem>>, vector<768x128xbf16>
    %cst_7 = arith.constant dense<0.000000e+00> : vector<2x128xf32>
    %9 = tpu.matmul %7, %8, %cst_7 {dimension_numbers = #tpu.dot_dimension_numbers<[1], [0], [0], [1], [0, 0, 1, 1], [], []>} : vector<2x768xbf16>, vector<768x128xbf16>, vector<2x128xf32> -> vector<2x128xf32>
    %10 = arith.addf %6, %9 : vector<2x128xf32>
    %c0_8 = arith.constant 0 : index
    %c0_9 = arith.constant 0 : index
    %11 = vector.load %arg4[%c0_8, %c0_9] : memref<1x128xf32, #tpu.memory_space<vmem>>, vector<1x128xf32>
    %12 = vector.broadcast %11 : vector<1x128xf32> to vector<2x128xf32>
    %13 = arith.addf %10, %12 : vector<2x128xf32>
    %c0_10 = arith.constant 0 : index
    %c0_11 = arith.constant 0 : index
    %14 = vector.load %arg5[%c0_10, %c0_11] : memref<2x128xf32, #tpu.memory_space<vmem>>, vector<2x128xf32>
    tpu.vector_store %arg5[%c0_10, %c0_11], %13 {strides = array<i32>} : memref<2x128xf32, #tpu.memory_space<vmem>>, vector<2x128xf32>,
    return
  }
}

</mosaic_0001>

<bundles_post_ra>
// kernel: tpu_custom_call.1
= control target key start
LH: loop header
LB: loop body
LE: loop exit
PB: predicated region body
PF: predicated region fallthrough
CT: control target
= control target key end

     0   :  { %10 = vsyncpa [#allocation3], 0  ;;  %s1776_s0 = inlined_call_operand.hbm [shape: f32[2,768], index: 0, kind: input, shape index: {}]   ;;  %s1777_s1 = inlined_call_operand.hbm [shape: f32[2,768], index: 1, kind: input, shape index: {}]   ;;  %s1778_s2 = inlined_call_operand.hbm [shape: bf16[768,128], index: 2, kind: input, shape index: {}]   ;;  %s1779_s3 = inlined_call_operand.hbm [shape: bf16[768,128], index: 3, kind: input, shape index: {}]   ;;  %s1780_s4 = inlined_call_operand.vmem [shape: f32[1,128], index: 4, kind: input, shape index: {}]   ;;  %s1781_s5 = inlined_call_operand.hbm [shape: f32[2,128], index: 5, kind: output, shape index: {}]  }
   0x1   :  { %11 = vsyncpa [#allocation6], 0 }
   0x2   :  { %12 = vsyncpa [#allocation9], 0 }
   0x3   :  { %13 = vsyncpa [#allocation4], 0  ;;  %s1644_s18 = smov [#allocation5]   ;;  %s1645_s20 = smov [#allocation2]  }
   0x4   :  { %s30_s19 = sshll.u32 %s1644_s18, 4  ;;  %s20_s21 = sshll.u32 %s1645_s20, 4  ;;  %s31_s19 = int_to_ptr.vmem [resolvable:$true] %s30_s19  ;;  %s21_s21 = int_to_ptr.vmem [resolvable:$true] %s20_s21 }
   0x5   :  { %s1526_s24 = scalar_lea.hbm %s1777_s1, 192 }
   0x6   :  { %p1527_p0 = scmp.ne.s32.totalorder %s1777_s1, %s1526_s24  ;;  %p1530_p1 = scmp.lt.u32.totalorder %s1526_s24, %s1777_s1 }
   0x8   :  { %p1532_p2 = pnand %p1530_p1, %p1527_p0 }
   0xa   :  { %1535 = shalt.err (!%p1532_p2)
}
   0xb   :  { %s1536_s29 = scalar_lea.vmem %s31_s19, 192  ;;  %p1541_p4 = scmp.lt.s32.totalorder %s31_s19, %s31_s19 }
   0xc   :  { %p1537_p3 = scmp.ne.s32.totalorder %s31_s19, %s1536_s29  ;;  %p1542_p5 = scmp.lt.s32.totalorder %s1536_s29, %s1536_s29 }
   0xe   :  { %p1543_p6 = por %p1542_p5, %p1541_p4 }
  0x10   :  { %p1544_p7 = pnand %p1543_p6, %p1537_p3 }
  0x12   :  { %1547 = shalt.err (!%p1544_p7)
}
  0x13   :  { %33 = dma.hbm_to_vmem [thread:$0]  %s1777_s1, 192, %s31_s19, [#allocation6]  }
  0x14   :  { %s1548_s9 = scalar_lea.hbm %s1776_s0, 192 }
  0x15   :  { %p1549_p8 = scmp.ne.s32.totalorder %s1776_s0, %s1548_s9  ;;  %p1552_p9 = scmp.lt.u32.totalorder %s1548_s9, %s1776_s0 }
  0x17   :  { %p1554_p10 = pnand %p1552_p9, %p1549_p8 }
  0x19   :  { %1557 = shalt.err (!%p1554_p10)
}
  0x1a   :  { %s1558_s14 = scalar_lea.vmem %s21_s21, 192  ;;  %p1563_p12 = scmp.lt.s32.totalorder %s21_s21, %s21_s21 }
  0x1b   :  { %p1559_p11 = scmp.ne.s32.totalorder %s21_s21, %s1558_s14  ;;  %p1564_p13 = scmp.lt.s32.totalorder %s1558_s14, %s1558_s14 }
  0x1d   :  { %p1565_p0 = por %p1564_p13, %p1563_p12 }
  0x1f   :  { %p1566_p1 = pnand %p1565_p0, %p1559_p11 }
  0x21   :  { %1569 = shalt.err (!%p1566_p1)
}
  0x22   :  { %23 = dma.hbm_to_vmem [thread:$0]  %s1776_s0, 192, %s21_s21, [#allocation3]  }
  0x23   :  { %s1646_s16 = smov [#allocation7]   ;;  %s1570_s20 = scalar_lea.hbm %s1778_s2, 6144 }
  0x24   :  { %s39_s17 = sshll.u32 %s1646_s16, 4  ;;  %p1571_p2 = scmp.ne.s32.totalorder %s1778_s2, %s1570_s20  ;;  %s40_s17 = int_to_ptr.vmem [resolvable:$true] %s39_s17 }
  0x25   :  { %p1574_p3 = scmp.lt.u32.totalorder %s1570_s20, %s1778_s2 }
  0x27   :  { %p1576_p4 = pnand %p1574_p3, %p1571_p2 }
  0x29   :  { %1579 = shalt.err (!%p1576_p4)
}
  0x2a   :  { %s1580_s26 = scalar_lea.vmem %s40_s17, 6144  ;;  %p1585_p6 = scmp.lt.s32.totalorder %s40_s17, %s40_s17 }
  0x2b   :  { %p1581_p5 = scmp.ne.s32.totalorder %s40_s17, %s1580_s26  ;;  %p1586_p7 = scmp.lt.s32.totalorder %s1580_s26, %s1580_s26 }
  0x2d   :  { %p1587_p8 = por %p1586_p7, %p1585_p6 }
  0x2f   :  { %p1588_p9 = pnand %p1587_p8, %p1581_p5 }
  0x31   :  { %1591 = shalt.err (!%p1588_p9)
}
  0x32   :  { %s1647_s0 = smov 64   ;;  %s1648_s21 = smov 4  }
  0x33   :  { %45 = dma.hbm_to_vmem [thread:$0]  %s1778_s2, 6144, %s40_s17, [#allocation6], %s1647_s0, %s1647_s0, %s1648_s21  }
  0x34   :  { %s1649_s29 = smov [#allocation8]   ;;  %s1592_s8 = scalar_lea.hbm %s1779_s3, 6144 }
  0x35   :  { %s51_s30 = sshll.u32 %s1649_s29, 4  ;;  %p1593_p10 = scmp.ne.s32.totalorder %s1779_s3, %s1592_s8  ;;  %s52_s30 = int_to_ptr.vmem [resolvable:$true] %s51_s30 }
  0x36   :  { %p1596_p11 = scmp.lt.u32.totalorder %s1592_s8, %s1779_s3 }
  0x38   :  { %p1598_p12 = pnand %p1596_p11, %p1593_p10 }
  0x3a   :  { %1601 = shalt.err (!%p1598_p12)
}
  0x3b   :  { %s1602_s13 = scalar_lea.vmem %s52_s30, 6144  ;;  %p1607_p0 = scmp.lt.s32.totalorder %s52_s30, %s52_s30 }
  0x3c   :  { %p1603_p13 = scmp.ne.s32.totalorder %s52_s30, %s1602_s13  ;;  %p1608_p1 = scmp.lt.s32.totalorder %s1602_s13, %s1602_s13 }
  0x3e   :  { %p1609_p2 = por %p1608_p1, %p1607_p0 }
  0x40   :  { %p1610_p3 = pnand %p1609_p2, %p1603_p13 }
  0x42   :  { %1613 = shalt.err (!%p1610_p3)
}
  0x43   :  { %57 = dma.hbm_to_vmem [thread:$0]  %s1779_s3, 6144, %s52_s30, [#allocation9], %s1647_s0, %s1647_s0, %s1648_s21  }
  0x44   :  { %1636 = dma.done.wait [#allocation3], 192  }
  0x45   :  { %1637 = vsyncadd [#allocation3], 4294967104 }
  0x46   :  { %1638 = dma.done.wait [#allocation6], 6336  }
  0x47   :  { %1639 = vsyncadd [#allocation6], 4294960960 }
  0x48   :  { %1640 = dma.done.wait [#allocation9], 6144  }
  0x49   :  { %1641 = vsyncadd [#allocation9], 4294961152  ;;  %v1430_v0 = vld [vmem:[#allocation8 + $0x40] sm:$0xff]   ;;  %v1434_v4 = vld [vmem:[#allocation8 + $0x48] sm:$0xff]   ;;  %v1650_v24 = vmov 1983009808   ;;  %v87_v26 = vlaneseq }
  0x4a   :  { %v1431_v1 = vld [vmem:[#allocation8 + $0xc0] sm:$0xff]   ;;  %1290 = vmatprep.subr.bf16.mxu0 %v1430_v0  ;;  %v1435_v5 = vld [vmem:[#allocation8 + $0xc8] sm:$0xff]   ;;  %v1438_v8 = vld [vmem:[#allocation8 + $0x50] sm:$0xff]   ;;  %v85_v25 = vunpack.c.l.s4 %v1650_v24  ;;  %s1651_s15 = smov [#allocation10]  }
  0x4b   :  { %v1432_v2 = vld [vmem:[#allocation8] sm:$0xff]   ;;  %1312 = vmatprep.subr.bf16.mxu1 %v1431_v1  ;;  %v1436_v6 = vld [vmem:[#allocation8 + $0x8] sm:$0xff]   ;;  %v1439_v9 = vld [vmem:[#allocation8 + $0xd0] sm:$0xff]   ;;  %v88_v32 = vshrl.u32 %v87_v26, 7  ;;  %s1182_s16 = sshll.u32 %s1651_s15, 4  ;;  %s1183_s16 = int_to_ptr.vmem [resolvable:$true] %s1182_s16 }
  0x4c   :  { %v1433_v3 = vld [vmem:[#allocation8 + $0x80] sm:$0xff]   ;;  %1291 = vmatpush3.bf16.msra.mxu0 %v1432_v2  ;;  %v1437_v7 = vld [vmem:[#allocation8 + $0x88] sm:$0xff]   ;;  %v1440_v10 = vld [vmem:[#allocation8 + $0x10] sm:$0xff]   ;;  %v86_v31 = vunpack.c.0.s8 %v85_v25  ;;  %s1614_s17 = scalar_lea.vmem %s1183_s16, 32  ;;  %p1619_p5 = scmp.lt.s32.totalorder %s1183_s16, %s1183_s16 }
  0x4d   :  { %1313 = vmatpush3.bf16.msra.mxu1 %v1433_v3  ;;  %1292 = vmatprep.subr.bf16.mxu0 %v1434_v4  ;;  %v1441_v11 = vld [vmem:[#allocation8 + $0x90] sm:$0xff]   ;;  %v1442_v12 = vld [vmem:[#allocation8 + $0x58] sm:$0xff]   ;;  %v1446_v16 = vld [vmem:[#allocation8 + $0x60] sm:$0xff]   ;;  %p1615_p4 = scmp.ne.s32.totalorder %s1183_s16, %s1614_s17  ;;  %p1620_p6 = scmp.lt.s32.totalorder %s1614_s17, %s1614_s17 }
  0x4e   :  { %1314 = vmatprep.subr.bf16.mxu1 %v1435_v5  ;;  %v1443_v13 = vld [vmem:[#allocation8 + $0xd8] sm:$0xff]   ;;  %v1447_v17 = vld [vmem:[#allocation8 + $0xe0] sm:$0xff]   ;;  %v1450_v20 = vld [vmem:[#allocation8 + $0x68] sm:$0xff]   ;;  %v1730_v37 = vsub.s32 %v86_v31, %v88_v32 }
  0x4f   :  { %v1444_v14 = vld [vmem:[#allocation8 + $0x18] sm:$0xff]   ;;  %v1448_v18 = vld [vmem:[#allocation8 + $0x20] sm:$0xff]   ;;  %v1451_v21 = vld [vmem:[#allocation8 + $0xe8] sm:$0xff]   ;;  %p1621_p7 = por %p1620_p6, %p1619_p5 }
  0x50   :  { %1293 = vmatpush3.bf16.msra.mxu0 %v1436_v6  ;;  %v1445_v15 = vld [vmem:[#allocation8 + $0x98] sm:$0xff]   ;;  %v1449_v19 = vld [vmem:[#allocation8 + $0xa0] sm:$0xff]   ;;  %v1452_v22 = vld [vmem:[#allocation8 + $0x28] sm:$0xff]  }
  0x51   :  { %1315 = vmatpush3.bf16.msra.mxu1 %v1437_v7  ;;  %1294 = vmatprep.subr.bf16.mxu0 %v1438_v8  ;;  %v1453_v23 = vld [vmem:[#allocation8 + $0xa8] sm:$0xff]   ;;  %v1454_v27 = vld [vmem:[#allocation8 + $0x70] sm:$0xff]   ;;  %v1458_v33 = vld [vmem:[#allocation8 + $0x78] sm:$0xff]   ;;  %p1622_p8 = pnand %p1621_p7, %p1615_p4 }
  0x52   :  { %1316 = vmatprep.subr.bf16.mxu1 %v1439_v9  ;;  %v1455_v28 = vld [vmem:[#allocation8 + $0xf0] sm:$0xff]   ;;  %v1459_v34 = vld [vmem:[#allocation8 + $0xf8] sm:$0xff]   ;;  %v73_v38 = vld [vmem:[#allocation2] sm:$0xff] }
  0x53   :  { %v1456_v29 = vld [vmem:[#allocation8 + $0x30] sm:$0xff]   ;;  %v1460_v35 = vld [vmem:[#allocation8 + $0x38] sm:$0xff]   ;;  %v1462_v42 = vld [vmem:[#allocation8 + $0x140] sm:$0xff]  }
  0x54   :  { %1295 = vmatpush3.bf16.msra.mxu0 %v1440_v10  ;;  %v1457_v30 = vld [vmem:[#allocation8 + $0xb0] sm:$0xff]   ;;  %v1461_v36 = vld [vmem:[#allocation8 + $0xb8] sm:$0xff]   ;;  %v1463_v43 = vld [vmem:[#allocation7 + $0x40] sm:$0xff]  }
  0x55   :  { %1317 = vmatpush3.bf16.msra.mxu1 %v1441_v11  ;;  %1296 = vmatprep.subr.bf16.mxu0 %v1442_v12  ;;  %v75_v39 = vld [vmem:[#allocation5] sm:$0xff]  ;;  %v1464_v51 = vld [vmem:[#allocation8 + $0x100] sm:$0xff]   ;;  %v1466_v56 = vld [vmem:[#allocation8 + $0x148] sm:$0xff]  }
  0x56   :  { %1318 = vmatprep.subr.bf16.mxu1 %v1443_v13  ;;  %v1732_v40 = vadd.f32 %v75_v39, %v73_v38  ;;  %v79_v41 = vmax.f32 %v73_v38, %v75_v39  ;;  %v1465_v54 = vld [vmem:[#allocation7] sm:$0xff]   ;;  %v1467_v58 = vld [vmem:[#allocation7 + $0x48] sm:$0xff]   ;;  %v1470_v62 = vld [vmem:[#allocation8 + $0x150] sm:$0xff]  }
  0x57   :  { %v1468_v60 = vld [vmem:[#allocation8 + $0x108] sm:$0xff]   ;;  %v1471_v63 = vld [vmem:[#allocation7 + $0x50] sm:$0xff]   ;;  %v1474_v2 = vld [vmem:[#allocation8 + $0x158] sm:$0xff]  }
  0x58   :  { %1297 = vmatpush3.bf16.msra.mxu0 %v1444_v14  ;;  %v225_v44 = vrot.slane %v79_v41, %v1730_v37  ;;  %v218_v45 = vcombine.high %v79_v41, %v79_v41  ;;  %v1737_v46 = vrot.slane %v1732_v40, %v1730_v37  ;;  %v1469_v61 = vld [vmem:[#allocation7 + $0x8] sm:$0xff]   ;;  %v1472_v0 = vld [vmem:[#allocation8 + $0x110] sm:$0xff]   ;;  %v1475_v3 = vld [vmem:[#allocation7 + $0x58] sm:$0xff]  }
  0x59   :  { %1319 = vmatpush3.bf16.msra.mxu1 %v1445_v15  ;;  %1298 = vmatprep.subr.bf16.mxu0 %v1446_v16  ;;  %v1473_v1 = vld [vmem:[#allocation7 + $0x10] sm:$0xff]   ;;  %v1476_v4 = vld [vmem:[#allocation8 + $0x118] sm:$0xff]   ;;  %v1478_v6 = vld [vmem:[#allocation8 + $0x160] sm:$0xff]  }
  0x5a   :  { %1320 = vmatprep.subr.bf16.mxu1 %v1447_v17  ;;  %v233_v47 = vcombine.high %v225_v44, %v225_v44  ;;  %v232_v48 = vrot.slane %v218_v45, %v1730_v37  ;;  %v98_v49 = vcombine.high %v1737_v46, %v1737_v46  ;;  %v249_v50 = vpack.c.bf16 %v225_v44, %v225_v44  ;;  %v1477_v5 = vld [vmem:[#allocation7 + $0x18] sm:$0xff]   ;;  %v1479_v7 = vld [vmem:[#allocation7 + $0x60] sm:$0xff]   ;;  %v1482_v10 = vld [vmem:[#allocation8 + $0x168] sm:$0xff]  }
  0x5b   :  { %v1480_v8 = vld [vmem:[#allocation8 + $0x120] sm:$0xff]   ;;  %v1483_v11 = vld [vmem:[#allocation7 + $0x68] sm:$0xff]   ;;  %v1486_v14 = vld [vmem:[#allocation8 + $0x170] sm:$0xff]   ;;  %v83_v17 = vcombine.high %v1732_v40, %v1732_v40  ;;  %v114_v39 = vpack.c.bf16 %v1737_v46, %v1737_v46 }
  0x5c   :  { %1299 = vmatpush3.bf16.msra.mxu0 %v1448_v18  ;;  %v250_v52 = vpack.c.bf16 %v233_v47, %v233_v47  ;;  %v234_v53 = vcombine.high %v232_v48, %v232_v48  ;;  %v251_v55 = vpack.c.bf16 %v232_v48, %v232_v48  ;;  %v115_v59 = vpack.c.bf16 %v98_v49, %v98_v49  ;;  %v1481_v9 = vld [vmem:[#allocation7 + $0x20] sm:$0xff]   ;;  %v1484_v12 = vld [vmem:[#allocation8 + $0x128] sm:$0xff]   ;;  %v1487_v15 = vld [vmem:[#allocation7 + $0x70] sm:$0xff]  }
  0x5d   :  { %1321 = vmatpush3.bf16.msra.mxu1 %v1449_v19  ;;  %1300 = vmatprep.subr.bf16.mxu0 %v1450_v20  ;;  %v1485_v13 = vld [vmem:[#allocation7 + $0x28] sm:$0xff]   ;;  %v1488_v16 = vld [vmem:[#allocation8 + $0x130] sm:$0xff]   ;;  %v1490_v19 = vld [vmem:[#allocation8 + $0x178] sm:$0xff]   ;;  %v1745_v24 = vrot.slane %v83_v17, %v1730_v37 }
  0x5e   :  { %1322 = vmatprep.subr.bf16.mxu1 %v1451_v21  ;;  %671 = vmatprep.mubr.bf16.mxu0 %v250_v52  ;;  %v252_v57 = vpack.c.bf16 %v234_v53, %v234_v53  ;;  %v1489_v18 = vld [vmem:[#allocation7 + $0x30] sm:$0xff]   ;;  %v76_v21 = vld [vmem:[#allocation5 + $0x8] sm:$0xf]  ;;  %v1495_v32 = vld [vmem:[#allocation7 + $0x140] sm:$0xff]  }
  0x5f   :  { %v74_v20 = vld [vmem:[#allocation2 + $0x8] sm:$0xf]  ;;  %v1492_v26 = vld [vmem:[#allocation8 + $0x138] sm:$0xff]   ;;  %v1498_v40 = vld [vmem:[#allocation7 + $0xc8] sm:$0xff]  }
  0x60   :  { %1301 = vmatpush3.bf16.msra.mxu0 %v1452_v22  ;;  %711 = vmatprep.mubr.bf16.mxu1 %v252_v57  ;;  %v1491_v22 = vld [vmem:[#allocation7 + $0x78] sm:$0xff]   ;;  %v78_v25 = vadd.f32 %v76_v21, %v74_v20  ;;  %v1499_v41 = vld [vmem:[#allocation7 + $0x148] sm:$0xff]   ;;  %v1502_v47 = vld [vmem:[#allocation7 + $0xd0] sm:$0xff]  }
  0x61   :  { %1323 = vmatpush3.bf16.msra.mxu1 %v1453_v23  ;;  %1302 = vmatprep.subr.bf16.mxu0 %v1454_v27  ;;  %v80_v23 = vmax.f32 %v74_v20, %v76_v21  ;;  %v1501_v45 = vld [vmem:[#allocation7 + $0x108] sm:$0xff]   ;;  %v1503_v48 = vld [vmem:[#allocation7 + $0x150] sm:$0xff]   ;;  %v1508_v52 = vld [vmem:[#allocation7 + $0x98] sm:$0xff]  }
  0x62   :  { %1324 = vmatprep.subr.bf16.mxu1 %v1455_v28  ;;  %v1494_v28 = vld [vmem:[#allocation7 + $0xc0] sm:$0xff]   ;;  %v1504_v46 = vld [vmem:[#allocation7 + $0x90] sm:$0xff]   ;;  %v1509_v53 = vld [vmem:[#allocation7 + $0x118] sm:$0xff]  }
  0x63   :  { %v241_v27 = vrot.slane %v80_v23, %v1730_v37  ;;  %v1505_v49 = vld [vmem:[#allocation7 + $0x110] sm:$0xff]   ;;  %v1513_v57 = vld [vmem:[#allocation7 + $0x120] sm:$0xff]  }
  0x64   :  { %1303 = vmatpush3.bf16.msra.mxu0 %v1456_v29  ;;  %v1749_v29 = vrot.slane %v78_v25, %v1730_v37  ;;  %v1497_v37 = vld [vmem:[#allocation7 + $0x100] sm:$0xff]  }
  0x65   :  { %1325 = vmatpush3.bf16.msra.mxu1 %v1457_v30  ;;  %1304 = vmatprep.subr.bf16.mxu0 %v1458_v33  ;;  %v1493_v30 = vld [vmem:[#allocation7 + $0x38] sm:$0xff]   ;;  %v242_v31 = vcombine.high %v241_v27, %v241_v27  ;;  %v99_v33 = vcombine.high %v1745_v24, %v1745_v24 }
  0x66   :  { %1326 = vmatprep.subr.bf16.mxu1 %v1459_v34  ;;  %v253_v34 = vpack.c.bf16 %v241_v27, %v241_v27 }
  0x67   :  { %v254_v38 = vpack.c.bf16 %v242_v31, %v242_v31 }
  0x68   :  { %1305 = vmatpush3.bf16.msra.mxu0 %v1460_v35  ;;  %v1496_v35 = vld [vmem:[#allocation7 + $0x80] sm:$0xff]  }
  0x69   :  { %1327 = vmatpush3.bf16.msra.mxu1 %v1461_v36  ;;  %1334 = vmatprep.subr.bf16.mxu0 %v1462_v42  ;;  %v107_v36 = vcombine.high %v1749_v29, %v1749_v29  ;;  %v117_v42 = vpack.c.bf16 %v99_v33, %v99_v33 }
  0x6a   :  { %1356 = vmatprep.subr.bf16.mxu1 %v1463_v43  ;;  %v1500_v43 = vld [vmem:[#allocation7 + $0x88] sm:$0xff]  }
  0x6b   :  { %672 = vmatmul.mubr.bf16.vlgmr.msra.gmra.mrb[0].mxu0 %v249_v50  ;;  %v119_v44 = vpack.c.bf16 %v107_v36, %v107_v36  ;;  %v1506_v50 = vld [vmem:[#allocation7 + $0xd8] sm:$0xff]  }
  0x6c   :  { %1335 = vmatpush3.bf16.msra.mxu0 %v1464_v51  ;;  %712 = vmatmul.mubr.bf16.vlgmr.msra.gmra.mrb[0].mxu1 %v251_v55  ;;  %v1507_v51 = vld [vmem:[#allocation7 + $0x158] sm:$0xff]   ;;  %v1511_v55 = vld [vmem:[#allocation7 + $0x160] sm:$0xff]  }
  0x6d   :  { %1336 = vmatprep.subr.bf16.mxu0 %v1466_v56  ;;  %1357 = vmatpush3.bf16.msra.mxu1 %v1465_v54  ;;  %v1510_v54 = vld [vmem:[#allocation7 + $0xe0] sm:$0xff]  }
  0x6e   :  { %1079 = vmatprep.mubr.bf16.mxu1 %v115_v59  ;;  %1358 = vmatprep.subr.bf16.mxu1 %v1467_v58  ;;  %v1512_v56 = vld [vmem:[#allocation7 + $0xa0] sm:$0xff]   ;;  %v1514_v58 = vld [vmem:[#allocation7 + $0xe8] sm:$0xff]  }
  0x6f   :  { %751 = vmatprep.mubr.bf16.mxu0 %v254_v38  ;;  %v1515_v59 = vld [vmem:[#allocation7 + $0x168] sm:$0xff]  }
  0x70   :  { %1337 = vmatpush3.bf16.msra.mxu0 %v1468_v60  ;;  %v1516_v60 = vld [vmem:[#allocation7 + $0xa8] sm:$0xff]  }
  0x71   :  { %1338 = vmatprep.subr.bf16.mxu0 %v1470_v62  ;;  %1359 = vmatpush3.bf16.msra.mxu1 %v1469_v61  ;;  %v1517_v61 = vld [vmem:[#allocation7 + $0x128] sm:$0xff]   ;;  %v1518_v62 = vld [vmem:[#allocation7 + $0xf0] sm:$0xff]  }
  0x72   :  { %1360 = vmatprep.subr.bf16.mxu1 %v1471_v63  ;;  %v1519_v63 = vld [vmem:[#allocation7 + $0x170] sm:$0xff]  }
  0x74   :  { %1339 = vmatpush3.bf16.msra.mxu0 %v1472_v0  ;;  %v1520_v0 = vld [vmem:[#allocation7 + $0xb0] sm:$0xff]  }
  0x75   :  { %1340 = vmatprep.subr.bf16.mxu0 %v1474_v2  ;;  %1361 = vmatpush3.bf16.msra.mxu1 %v1473_v1  ;;  %v1521_v1 = vld [vmem:[#allocation7 + $0x130] sm:$0xff]   ;;  %v1522_v2 = vld [vmem:[#allocation7 + $0xf8] sm:$0xff]  }
  0x76   :  { %1362 = vmatprep.subr.bf16.mxu1 %v1475_v3  ;;  %v1523_v3 = vld [vmem:[#allocation7 + $0x178] sm:$0xff]  }
  0x78   :  { %1341 = vmatpush3.bf16.msra.mxu0 %v1476_v4  ;;  %v1524_v4 = vld [vmem:[#allocation7 + $0xb8] sm:$0xff]  }
  0x79   :  { %1342 = vmatprep.subr.bf16.mxu0 %v1478_v6  ;;  %1363 = vmatpush3.bf16.msra.mxu1 %v1477_v5  ;;  %v1525_v5 = vld [vmem:[#allocation7 + $0x138] sm:$0xff]   ;;  %v116_v6 = vpack.c.bf16 %v1745_v24, %v1745_v24 }
  0x7a   :  { %1364 = vmatprep.subr.bf16.mxu1 %v1479_v7  ;;  %v118_v7 = vpack.c.bf16 %v1749_v29, %v1749_v29 }
  0x7c   :  { %1343 = vmatpush3.bf16.msra.mxu0 %v1480_v8 }
  0x7d   :  { %1344 = vmatprep.subr.bf16.mxu0 %v1482_v10  ;;  %1365 = vmatpush3.bf16.msra.mxu1 %v1481_v9 }
  0x7e   :  { %1366 = vmatprep.subr.bf16.mxu1 %v1483_v11 }
  0x80   :  { %1345 = vmatpush3.bf16.msra.mxu0 %v1484_v12 }
  0x81   :  { %1346 = vmatprep.subr.bf16.mxu0 %v1486_v14  ;;  %1367 = vmatpush3.bf16.msra.mxu1 %v1485_v13 }
  0x82   :  { %1368 = vmatprep.subr.bf16.mxu1 %v1487_v15 }
  0x84   :  { %1347 = vmatpush3.bf16.msra.mxu0 %v1488_v16 }
  0x85   :  { %1348 = vmatprep.subr.bf16.mxu0 %v1490_v19  ;;  %1369 = vmatpush3.bf16.msra.mxu1 %v1489_v18 }
  0x86   :  { %1370 = vmatprep.subr.bf16.mxu1 %v1491_v22 }
  0x88   :  { %1349 = vmatpush3.bf16.msra.mxu0 %v1492_v26 }
  0x89   :  { %1378 = vmatprep.subr.bf16.mxu0 %v1494_v28  ;;  %1371 = vmatpush3.bf16.msra.mxu1 %v1493_v30 }
  0x8a   :  { %1400 = vmatprep.subr.bf16.mxu1 %v1495_v32 }
  0x8b   :  { %752 = vmatmul.mubr.bf16.vlgmr.msra.gmra.mrb[4].mxu0 %v253_v34 }
  0x8c   :  { %1080 = vmatmul.mubr.bf16.vlgmr.msra.gmra.mrb[4].mxu1 %v114_v39  ;;  %1379 = vmatpush3.bf16.msra.mxu0 %v1496_v35 }
  0x8d   :  { %1401 = vmatpush3.bf16.msra.mxu1 %v1497_v37  ;;  %1380 = vmatprep.subr.bf16.mxu0 %v1498_v40 }
  0x8e   :  { %1402 = vmatprep.subr.bf16.mxu1 %v1499_v41  ;;  %1119 = vmatprep.mubr.bf16.mxu0 %v117_v42  ;;  %v1289_v42 = vld [vmem:[%s1780_s4] ss:$0 sm:$0xff] }
  0x8f   :  { %1159 = vmatprep.mubr.bf16.mxu1 %v119_v44 }
  0x90   :  { %1381 = vmatpush3.bf16.msra.mxu0 %v1500_v43 }
  0x91   :  { %1403 = vmatpush3.bf16.msra.mxu1 %v1501_v45  ;;  %1382 = vmatprep.subr.bf16.mxu0 %v1502_v47 }
  0x92   :  { %1404 = vmatprep.subr.bf16.mxu1 %v1503_v48 }
  0x94   :  { %1383 = vmatpush3.bf16.msra.mxu0 %v1504_v46 }
  0x95   :  { %1405 = vmatpush3.bf16.msra.mxu1 %v1505_v49  ;;  %1384 = vmatprep.subr.bf16.mxu0 %v1506_v50 }
  0x96   :  { %1406 = vmatprep.subr.bf16.mxu1 %v1507_v51 }
  0x98   :  { %1385 = vmatpush3.bf16.msra.mxu0 %v1508_v52 }
  0x99   :  { %1407 = vmatpush3.bf16.msra.mxu1 %v1509_v53  ;;  %1386 = vmatprep.subr.bf16.mxu0 %v1510_v54 }
  0x9a   :  { %1408 = vmatprep.subr.bf16.mxu1 %v1511_v55 }
  0x9c   :  { %1387 = vmatpush3.bf16.msra.mxu0 %v1512_v56 }
  0x9d   :  { %1409 = vmatpush3.bf16.msra.mxu1 %v1513_v57  ;;  %1388 = vmatprep.subr.bf16.mxu0 %v1514_v58 }
  0x9e   :  { %1410 = vmatprep.subr.bf16.mxu1 %v1515_v59 }
  0xa0   :  { %1389 = vmatpush3.bf16.msra.mxu0 %v1516_v60 }
  0xa1   :  { %1411 = vmatpush3.bf16.msra.mxu1 %v1517_v61  ;;  %1390 = vmatprep.subr.bf16.mxu0 %v1518_v62 }
  0xa2   :  { %1412 = vmatprep.subr.bf16.mxu1 %v1519_v63 }
  0xa4   :  { %1391 = vmatpush3.bf16.msra.mxu0 %v1520_v0 }
  0xa5   :  { %1413 = vmatpush3.bf16.msra.mxu1 %v1521_v1  ;;  %1392 = vmatprep.subr.bf16.mxu0 %v1522_v2 }
  0xa6   :  { %1414 = vmatprep.subr.bf16.mxu1 %v1523_v3 }
  0xa8   :  { %1393 = vmatpush3.bf16.msra.mxu0 %v1524_v4 }
  0xa9   :  { %1415 = vmatpush3.bf16.msra.mxu1 %v1525_v5 }
  0xab   :  { %1120 = vmatmul.mubr.bf16.vlgmr.msra.gmra.mrb[8].mxu0 %v116_v6 }
  0xac   :  { %1160 = vmatmul.mubr.bf16.vlgmr.msra.gmra.mrb[8].mxu1 %v118_v7 }
 0x13e   :  { %v1306_v8 = vpop.f32.mrb[0].mxu0 }
 0x13f   :  { %v1307_v9 = vpop.f32.mrb[1].mxu0  ;;  %v1328_v10 = vpop.f32.mrb[0].mxu1 }
 0x140   :  { %v1308_v11 = vadd.f32 %v1307_v9, %v1306_v8  ;;  %v1309_v12 = vpop.f32.mrb[2].mxu0  ;;  %v1329_v13 = vpop.f32.mrb[1].mxu1 }
 0x141   :  { %v1310_v14 = vpop.f32.mrb[3].mxu0  ;;  %v1330_v15 = vadd.f32 %v1329_v13, %v1328_v10  ;;  %v1331_v16 = vpop.f32.mrb[2].mxu1 }
 0x142   :  { %v1332_v17 = vpop.f32.mrb[3].mxu1 }
 0x143   :  { %v714_v18 = vadd.f32 %v1330_v15, %v1308_v11 }
 0x15e   :  { %v1350_v19 = vpop.f32.mrb[4].mxu0 }
 0x15f   :  { %v1372_v20 = vpop.f32.mrb[4].mxu1  ;;  %v1351_v21 = vpop.f32.mrb[5].mxu0 }
 0x160   :  { %v1352_v22 = vadd.f32 %v1351_v21, %v1350_v19  ;;  %v1373_v23 = vpop.f32.mrb[5].mxu1  ;;  %v1353_v24 = vpop.f32.mrb[6].mxu0 }
 0x161   :  { %v1374_v25 = vadd.f32 %v1373_v23, %v1372_v20  ;;  %v1375_v26 = vpop.f32.mrb[6].mxu1  ;;  %v1354_v27 = vpop.f32.mrb[7].mxu0 }
 0x162   :  { %v754_v28 = vadd.f32 %v1352_v22, %v714_v18  ;;  %v1376_v29 = vpop.f32.mrb[7].mxu1 }
 0x164   :  { %v1082_v30 = vadd.f32 %v1374_v25, %v754_v28 }
 0x17e   :  { %v1394_v31 = vpop.f32.mrb[8].mxu0 }
 0x17f   :  { %v1416_v32 = vpop.f32.mrb[8].mxu1  ;;  %v1395_v33 = vpop.f32.mrb[9].mxu0 }
 0x180   :  { %v1396_v34 = vadd.f32 %v1395_v33, %v1394_v31  ;;  %v1417_v35 = vpop.f32.mrb[9].mxu1  ;;  %v1397_v36 = vpop.f32.mrb[10].mxu0 }
 0x181   :  { %v1418_v38 = vadd.f32 %v1417_v35, %v1416_v32  ;;  %v1419_v39 = vpop.f32.mrb[10].mxu1  ;;  %v1398_v37 = vpop.f32.mrb[11].mxu0 }
 0x182   :  { %v1122_v40 = vadd.f32 %v1396_v34, %v1082_v30  ;;  %v1420_v41 = vpop.f32.mrb[11].mxu1 }
 0x184   :  { %v1162_v43 = vadd.f32 %v1418_v38, %v1122_v40 }
 0x186   :  { %v1174_v44 = vadd.f32 %v1289_v42, %v1162_v43 }
 0x188   :  { %1175 = vst [vmem:[#allocation10] sm:$0x3] %v1174_v44 }
 0x189   :  { %1625 = shalt.err (!%p1622_p8)
}
 0x18a   :  { %s1626_s20 = scalar_lea.hbm %s1781_s5, 32 }
 0x18b   :  { %p1627_p9 = scmp.ne.s32.totalorder %s1781_s5, %s1626_s20  ;;  %p1630_p10 = scmp.lt.u32.totalorder %s1626_s20, %s1781_s5 }
 0x18d   :  { %p1632_p11 = pnand %p1630_p10, %p1627_p9 }
 0x18f   :  { %1635 = shalt.err (!%p1632_p11)
}
 0x190   :  { %1185 = dma.vmem_to_hbm [thread:$0]  %s1183_s16, 32, %s1781_s5, [#allocation4]  }
 0x191   :  { %1642 = dma.done.wait [#allocation4], 32  }
 0x192   :  { %1643 = vsyncadd [#allocation4], 4294967264 }
 0x193   :  { %1189 = vsyncpa [#allocation3], 1 }
 0x194   :  { %1190 = vsyncpa [#allocation6], 1 }
 0x195   :  { %1191 = vsyncpa [#allocation9], 1 }
 0x196   :  { %1192 = vsyncpa [#allocation4], 1 }

</bundles_post_ra>
